<compile_context>
chip_gen: v6e
topology: v6e:2x2x1
jax: 0.10.0
libtpu: 0.0.40
codegen_flags: <defaults>
</compile_context>

<pallas_src>
import functools
import math

import jax
import jax.numpy as jnp
from jax.experimental import pallas as pl
from jax.experimental.pallas import tpu as pltpu

_LANE = 128            # f32 lane width
_TB_MAX = 65536        # max batch-lanes per grid step (multiple of 128)
_VMEM_LIMIT = 32 * 1024 * 1024   # explicit scoped-VMEM budget (safe on v5e/v6e/v7x)


def motivation_kernel(x_ref, w1_ref, b1_ref, w2_ref, b2_ref, w3_ref, b3_ref,
                      o_ref):
    x = x_ref[...]                                             # (4, TB)
    # hidden1 = relu(W1 @ x + b1)            -> (32, TB)
    h1 = jnp.dot(w1_ref[...], x, preferred_element_type=jnp.float32)
    h1 = jnp.maximum(h1 + b1_ref[...], 0.0)
    # hidden2 = relu(W2 @ h1 + b2)           -> (16, TB)
    h2 = jnp.dot(w2_ref[...], h1, preferred_element_type=jnp.float32)
    h2 = jnp.maximum(h2 + b2_ref[...], 0.0)
    # control = sigmoid(W3 @ h2 + b3)        -> (3, TB)
    logits = jnp.dot(w3_ref[...], h2, preferred_element_type=jnp.float32)
    o_ref[...] = jax.nn.sigmoid(logits + b3_ref[...])


def _choose_tiles(batch, tb_max):
    """Pick (padded_batch, tile) — tile a multiple of 128 that divides padded_batch.

    Targets >=2 grid steps when the batch spans more than one lane-tile so the
    'parallel' axis actually engages both v7x TensorCores, while capping the
    tile at tb_max to bound VMEM.
    """
    b_pad = -(-batch // _LANE) * _LANE
    if b_pad <= _LANE:
        return b_pad, b_pad
    half = -(-b_pad // (2 * _LANE)) * _LANE      # ~half, rounded up to 128
    tb = min(tb_max, half)
    b_pad = -(-b_pad // tb) * tb
    return b_pad, tb


def _feature_major_call(xt, params, tb):
    """xt: (4, b_pad) f32 with b_pad % tb == 0.  Returns (3, b_pad) f32."""
    w1, b1, w2, b2, w3, b3 = params
    b_pad = xt.shape[1]
    grid = (b_pad // tb,)
    const = lambda shape: pl.BlockSpec(shape, lambda i: (0, 0))

    cost = pl.CostEstimate(
        flops=2 * (4 * 32 + 32 * 16 + 16 * 3) * b_pad,
        transcendentals=3 * b_pad,
        bytes_accessed=(4 + 3) * 4 * b_pad
        + 4 * (32 * 4 + 32 + 16 * 32 + 16 + 3 * 16 + 3),
    )

    return pl.pallas_call(
        motivation_kernel,
        out_shape=jax.ShapeDtypeStruct((3, b_pad), jnp.float32),
        grid_spec=pltpu.PrefetchScalarGridSpec(
            num_scalar_prefetch=0,
            grid=grid,
            in_specs=[
                pl.BlockSpec((4, tb), lambda i: (0, i)),   # x^T tile (lane-dense)
                const((32, 4)),                            # W1 (resident)
                const((32, 1)),                            # b1
                const((16, 32)),                           # W2
                const((16, 1)),                            # b2
                const((3, 16)),                            # W3
                const((3, 1)),                             # b3
            ],
            out_specs=pl.BlockSpec((3, tb), lambda i: (0, i)),
        ),
        compiler_params=pltpu.CompilerParams(
            dimension_semantics=("parallel",),             # megacore batch shard
            vmem_limit_bytes=_VMEM_LIMIT,
        ),
        cost_estimate=cost,
    )(xt, w1, b1, w2, b2, w3, b3)


@functools.partial(jax.jit, static_argnames=("tb_max",))
def motivation_nn_forward(x, params, tb_max=_TB_MAX):
    """PyTorch-layout entry: x (batch, 4) f32 -> (batch, 3) f32."""
    batch = x.shape[0]
    b_pad, tb = _choose_tiles(batch, tb_max)
    # Fused pad + transpose (no zeros/scatter kernels under jit).
    xt = jnp.pad(x.astype(jnp.float32), ((0, b_pad - batch), (0, 0))).T
    out_t = _feature_major_call(xt, params, tb)
    return out_t[:, :batch].T


@functools.partial(jax.jit, static_argnames=("tb_max",))
def motivation_nn_forward_feature_major(xt, params, tb_max=_TB_MAX):
    """Lane-dense entry for callers that keep feature-major layout:
    xt (4, batch) f32 -> (3, batch) f32 (no wrapper transposes)."""
    batch = xt.shape[1]
    b_pad, tb = _choose_tiles(batch, tb_max)
    xt_p = jnp.pad(xt.astype(jnp.float32), ((0, 0), (0, b_pad - batch)))
    return _feature_major_call(xt_p, params, tb)[:, :batch]


def xavier_uniform(key, fan_out, fan_in):
    # matches torch.nn.init.xavier_uniform_; stored PyTorch-style (out, in)
    bound = math.sqrt(6.0 / (fan_in + fan_out))
    return jax.random.uniform(key, (fan_out, fan_in), jnp.float32,
                              minval=-bound, maxval=bound)


def linear_bias(key, fan_out, fan_in):
    # matches torch.nn.Linear default bias init: U(-1/sqrt(fan_in), 1/sqrt(fan_in))
    bound = 1.0 / math.sqrt(fan_in)
    return jax.random.uniform(key, (fan_out, 1), jnp.float32,
                              minval=-bound, maxval=bound)


def init_params(key):
    k1, k2, k3, k4, k5, k6 = jax.random.split(key, 6)
    w1 = xavier_uniform(k1, 32, 4)
    b1 = linear_bias(k2, 32, 4)
    w2 = xavier_uniform(k3, 16, 32)
    b2 = linear_bias(k4, 16, 32)
    w3 = xavier_uniform(k5, 3, 16)
    b3 = linear_bias(k6, 3, 16)
    return (w1, b1, w2, b2, w3, b3)


if __name__ == "__main__":
    key = jax.random.PRNGKey(0)
    pkey, xkey = jax.random.split(key)
    params = init_params(pkey)

    batch = 8
    x = jax.random.normal(xkey, (batch, 4), jnp.float32)

    out = motivation_nn_forward(x, params)
    out = jax.block_until_ready(out)

    # reference in plain JAX (row-major, PyTorch semantics)
    w1, b1, w2, b2, w3, b3 = params
    h1 = jnp.maximum(x @ w1.T + b1.T, 0.0)
    h2 = jnp.maximum(h1 @ w2.T + b2.T, 0.0)
    ref = jax.nn.sigmoid(h2 @ w3.T + b3.T)
    assert out.shape == (batch, 3)
    assert jnp.allclose(out, ref, atol=1e-5), "mismatch vs. reference"

    # also exercise the feature-major (transpose-free) entry point
    out_fm = jax.block_until_ready(
        motivation_nn_forward_feature_major(x.T, params))
    assert out_fm.shape == (3, batch)
    assert jnp.allclose(out_fm.T, ref, atol=1e-5), "feature-major mismatch"

    print("KERNEL_OK")
</pallas_src>

<mosaic_0001>
module attributes {stable_mosaic.version = 11 : i64} {
  func.func @motivation_kernel(%arg0: i32, %arg1: memref<4x128xf32, #tpu.memory_space<vmem>>, %arg2: memref<32x4xf32, #tpu.memory_space<vmem>>, %arg3: memref<32x1xf32, #tpu.memory_space<vmem>>, %arg4: memref<16x32xf32, #tpu.memory_space<vmem>>, %arg5: memref<16x1xf32, #tpu.memory_space<vmem>>, %arg6: memref<3x16xf32, #tpu.memory_space<vmem>>, %arg7: memref<3x1xf32, #tpu.memory_space<vmem>>, %arg8: memref<3x128xf32, #tpu.memory_space<vmem>>) attributes {dimension_semantics = [#tpu.dimension_semantics<parallel>], iteration_bounds = array<i64: 1>, scalar_prefetch = 0 : i64, scratch_operands = 0 : i64, tpu.core_type = #tpu.core_type<tc>, window_params = [{transform_indices = @transform_0, window_bounds = array<i64: 4, 128>}, {pipeline_mode = #tpu.pipeline_mode<synchronous>, transform_indices = @transform_1, window_bounds = array<i64: 32, 4>}, {pipeline_mode = #tpu.pipeline_mode<synchronous>, transform_indices = @transform_2, window_bounds = array<i64: 32, 1>}, {pipeline_mode = #tpu.pipeline_mode<synchronous>, transform_indices = @transform_3, window_bounds = array<i64: 16, 32>}, {pipeline_mode = #tpu.pipeline_mode<synchronous>, transform_indices = @transform_4, window_bounds = array<i64: 16, 1>}, {pipeline_mode = #tpu.pipeline_mode<synchronous>, transform_indices = @transform_5, window_bounds = array<i64: 3, 16>}, {pipeline_mode = #tpu.pipeline_mode<synchronous>, transform_indices = @transform_6, window_bounds = array<i64: 3, 1>}, {transform_indices = @transform_7, window_bounds = array<i64: 3, 128>}]} {
    %c0 = arith.constant 0 : index
    %c0_0 = arith.constant 0 : index
    %0 = vector.load %arg1[%c0, %c0_0] : memref<4x128xf32, #tpu.memory_space<vmem>>, vector<4x128xf32>
    %c0_1 = arith.constant 0 : index
    %c0_2 = arith.constant 0 : index
    %1 = vector.load %arg2[%c0_1, %c0_2] : memref<32x4xf32, #tpu.memory_space<vmem>>, vector<32x4xf32>
    %cst = arith.constant dense<0.000000e+00> : vector<32x128xf32>
    %2 = tpu.matmul %1, %0, %cst {dimension_numbers = #tpu.dot_dimension_numbers<[1], [0], [0], [1], [0, 0, 1, 1], [], []>} : vector<32x4xf32>, vector<4x128xf32>, vector<32x128xf32> -> vector<32x128xf32>
    %c0_3 = arith.constant 0 : index
    %c0_4 = arith.constant 0 : index
    %3 = vector.load %arg3[%c0_3, %c0_4] : memref<32x1xf32, #tpu.memory_space<vmem>>, vector<32x1xf32>
    %4 = vector.broadcast %3 : vector<32x1xf32> to vector<32x128xf32>
    %5 = arith.addf %2, %4 : vector<32x128xf32>
    %cst_5 = arith.constant 0.000000e+00 : f32
    %6 = vector.broadcast %cst_5 : f32 to vector<32x128xf32>
    %7 = arith.maximumf %5, %6 : vector<32x128xf32>
    %c0_6 = arith.constant 0 : index
    %c0_7 = arith.constant 0 : index
    %8 = vector.load %arg4[%c0_6, %c0_7] : memref<16x32xf32, #tpu.memory_space<vmem>>, vector<16x32xf32>
    %cst_8 = arith.constant dense<0.000000e+00> : vector<16x128xf32>
    %9 = tpu.matmul %8, %7, %cst_8 {dimension_numbers = #tpu.dot_dimension_numbers<[1], [0], [0], [1], [0, 0, 1, 1], [], []>} : vector<16x32xf32>, vector<32x128xf32>, vector<16x128xf32> -> vector<16x128xf32>
    %c0_9 = arith.constant 0 : index
    %c0_10 = arith.constant 0 : index
    %10 = vector.load %arg5[%c0_9, %c0_10] : memref<16x1xf32, #tpu.memory_space<vmem>>, vector<16x1xf32>
    %11 = vector.broadcast %10 : vector<16x1xf32> to vector<16x128xf32>
    %12 = arith.addf %9, %11 : vector<16x128xf32>
    %cst_11 = arith.constant 0.000000e+00 : f32
    %13 = vector.broadcast %cst_11 : f32 to vector<16x128xf32>
    %14 = arith.maximumf %12, %13 : vector<16x128xf32>
    %c0_12 = arith.constant 0 : index
    %c0_13 = arith.constant 0 : index
    %15 = vector.load %arg6[%c0_12, %c0_13] : memref<3x16xf32, #tpu.memory_space<vmem>>, vector<3x16xf32>
    %cst_14 = arith.constant dense<0.000000e+00> : vector<3x128xf32>
    %16 = tpu.matmul %15, %14, %cst_14 {dimension_numbers = #tpu.dot_dimension_numbers<[1], [0], [0], [1], [0, 0, 1, 1], [], []>} : vector<3x16xf32>, vector<16x128xf32>, vector<3x128xf32> -> vector<3x128xf32>
    %c0_15 = arith.constant 0 : index
    %c0_16 = arith.constant 0 : index
    %17 = vector.load %arg7[%c0_15, %c0_16] : memref<3x1xf32, #tpu.memory_space<vmem>>, vector<3x1xf32>
    %18 = vector.broadcast %17 : vector<3x1xf32> to vector<3x128xf32>
    %19 = arith.addf %16, %18 : vector<3x128xf32>
    %20 = arith.negf %19 : vector<3x128xf32>
    %21 = math.exp %20 : vector<3x128xf32>
    %cst_17 = arith.constant 1.000000e+00 : f32
    %22 = vector.broadcast %cst_17 : f32 to vector<3x128xf32>
    %23 = arith.addf %22, %21 : vector<3x128xf32>
    %24 = arith.divf %22, %23 : vector<3x128xf32>
    %c0_18 = arith.constant 0 : index
    %c0_19 = arith.constant 0 : index
    %25 = vector.load %arg8[%c0_18, %c0_19] : memref<3x128xf32, #tpu.memory_space<vmem>>, vector<3x128xf32>
    tpu.vector_store %arg8[%c0_18, %c0_19], %24 {strides = array<i32>} : memref<3x128xf32, #tpu.memory_space<vmem>>, vector<3x128xf32>,
    return
  }
  func.func @transform_0(%arg0: i32) -> (i32, i32) {
    %c0_i32 = arith.constant 0 : i32
    %c0_i32_0 = arith.constant 0 : i32
    return %c0_i32, %arg0 : i32, i32
  }
  func.func @transform_1(%arg0: i32) -> (i32, i32) {
    %c0_i32 = arith.constant 0 : i32
    %c0_i32_0 = arith.constant 0 : i32
    %c0_i32_1 = arith.constant 0 : i32
    return %c0_i32, %c0_i32_0 : i32, i32
  }
  func.func @transform_2(%arg0: i32) -> (i32, i32) {
    %c0_i32 = arith.constant 0 : i32
    %c0_i32_0 = arith.constant 0 : i32
    %c0_i32_1 = arith.constant 0 : i32
    return %c0_i32, %c0_i32_0 : i32, i32
  }
  func.func @transform_3(%arg0: i32) -> (i32, i32) {
    %c0_i32 = arith.constant 0 : i32
    %c0_i32_0 = arith.constant 0 : i32
    %c0_i32_1 = arith.constant 0 : i32
    return %c0_i32, %c0_i32_0 : i32, i32
  }
  func.func @transform_4(%arg0: i32) -> (i32, i32) {
    %c0_i32 = arith.constant 0 : i32
    %c0_i32_0 = arith.constant 0 : i32
    %c0_i32_1 = arith.constant 0 : i32
    return %c0_i32, %c0_i32_0 : i32, i32
  }
  func.func @transform_5(%arg0: i32) -> (i32, i32) {
    %c0_i32 = arith.constant 0 : i32
    %c0_i32_0 = arith.constant 0 : i32
    %c0_i32_1 = arith.constant 0 : i32
    return %c0_i32, %c0_i32_0 : i32, i32
  }
  func.func @transform_6(%arg0: i32) -> (i32, i32) {
    %c0_i32 = arith.constant 0 : i32
    %c0_i32_0 = arith.constant 0 : i32
    %c0_i32_1 = arith.constant 0 : i32
    return %c0_i32, %c0_i32_0 : i32, i32
  }
  func.func @transform_7(%arg0: i32) -> (i32, i32) {
    %c0_i32 = arith.constant 0 : i32
    %c0_i32_0 = arith.constant 0 : i32
    return %c0_i32, %arg0 : i32, i32
  }
}

</mosaic_0001>

<bundles_post_ra>
// kernel: motivation_nn_forward.1
= control target key start
LH: loop header
LB: loop body
LE: loop exit
PB: predicated region body
PF: predicated region fallthrough
CT: control target
= control target key end

     0   :  { %vm68_vm0 = vcmask 1043456   ;;  %vm55_vm1 = vcmask 31744   ;;  %v409_v3 = vmov 0   ;;  %vm175_vm2 = vcmask 261120   ;;  %s506_s0 = inlined_call_operand.vmem [shape: f32[4,128], index: 0, kind: input, shape index: {}]   ;;  %s507_s1 = inlined_call_operand.vmem [shape: f32[32,4], index: 1, kind: input, shape index: {}]   ;;  %s508_s2 = inlined_call_operand.vmem [shape: f32[32,1], index: 2, kind: input, shape index: {}]   ;;  %s509_s4 = inlined_call_operand.vmem [shape: f32[16,1], index: 4, kind: input, shape index: {}]   ;;  %s510_s6 = inlined_call_operand.vmem [shape: f32[3,1], index: 6, kind: input, shape index: {}]   ;;  %s511_s3 = inlined_call_operand.vmem [shape: f32[16,32], index: 3, kind: input, shape index: {}]   ;;  %s512_s5 = inlined_call_operand.vmem [shape: f32[3,16], index: 5, kind: input, shape index: {}]   ;;  %s513_s7 = inlined_call_operand.vmem [shape: f32[3,128], index: 7, kind: output, shape index: {}]  }
   0x1   :  { %v26_v0 = vld [vmem:[%s506_s0] sm:$0xf]  ;;  %v28_v2 = vld [vmem:[%s507_s1 + $0x8] sm:$0xff]  ;;  %403 = vset.pattern.permute.xlu0 %v409_v3  ;;  %404 = vset.pattern.permute.xlu1 %v409_v3  ;;  %v29_v4 = vld [vmem:[%s507_s1 + $0x10] sm:$0xff]  ;;  %v410_v31 = vmov 0.0   ;;  %vm411_vm3 = vmmov 0  }
   0x2   :  { %v27_v1 = vld [vmem:[%s507_s1] sm:$0xff]  ;;  %374 = vmatprep.subr.msk.mxu0 %vm68_vm0, %v26_v0  ;;  %v34_v5 = vld [vmem:[%s508_s2 + $0x18] sm:$0xff]  ;;  %v32_v6 = vld [vmem:[%s508_s2 + $0x8] sm:$0xff]  ;;  %vm266_vm4 = vcmask 130048  }
   0x3   :  { %376 = vmatprep.mubr.msk.f32.mxu0 %vm55_vm1, %v27_v1  ;;  %375 = vmatpush3.msk.msra.mxu0 %vm68_vm0, %v26_v0  ;;  %v33_v7 = vld [vmem:[%s508_s2 + $0x10] sm:$0xff]  ;;  %v30_v8 = vld [vmem:[%s507_s1 + $0x18] sm:$0xff]  ;;  %v31_v9 = vld [vmem:[%s508_s2] sm:$0xff] }
   0x4   :  { %52 = vperm.xlu0 %403, %v34_v5   ;;  %377 = vmatmul.mubr.msk.f32.vlgmr.msra.gmra.mxu0 %vm55_vm1, %v28_v2  ;;  %v164_v10 = vld [vmem:[%s509_s4 + $0x8] sm:$0xff]  ;;  %v163_v11 = vld [vmem:[%s509_s4] sm:$0xff] }
   0x5   :  { %42 = vperm.xlu1 %404, %v32_v6   ;;  %379 = vmatprep.mubr.msk.f32.mxu0 %vm55_vm1, %v29_v4  ;;  %v260_v12 = vld [vmem:[%s510_s6] sm:$0x7]  ;;  %v162_v30 = vld [vmem:[%s511_s3 + $0x8] sm:$0xff] }
   0x6   :  { %v161_v13 = vld [vmem:[%s511_s3] sm:$0xff]  ;;  %393 = vmatprep.subr.mxu0 %v410_v31 }
   0x7   :  { %390 = vmatprep.mubr.msk.f32.mxu1 %vm175_vm2, %v161_v13  ;;  %v259_v40 = vld [vmem:[%s512_s5] sm:$0x7] }
   0x8   :  { %47 = vperm.xlu0 %403, %v33_v7   ;;  %380 = vmatmul.mubr.msk.f32.gmra.mxu0 %vm55_vm1, %v30_v8 }
   0x9   :  { %37 = vperm.xlu1 %404, %v31_v9   ;;  %397 = vmatprep.mubr.msk.f32.mxu0 %vm411_vm3, %v410_v31 }
   0xc   :  { %172 = vperm.xlu0 %403, %v164_v10  }
   0xd   :  { %167 = vperm.xlu1 %404, %v163_v11  }
  0x10   :  { %263 = vperm.xlu0 %403, %v260_v12  }
  0x7f   :  { %v53_v14 = vpop.permute.xlu0 %52 }
  0x80   :  { %v43_v15 = vpop.permute.xlu1 %42 }
  0x83   :  { %v48_v19 = vpop.permute.xlu0 %47 }
  0x84   :  { %v38_v21 = vpop.permute.xlu1 %37 }
  0x87   :  { %v173_v32 = vpop.permute.xlu0 %172 }
  0x88   :  { %v168_v35 = vpop.permute.xlu1 %167 }
  0x8b   :  { %v264_v41 = vpop.permute.xlu0 %263 }
  0xc4   :  { %v378_v16 = vpop.f32.mrf.mxu0 }
  0xc5   :  { %v144_v23 = vadd.f32 %v378_v16, %v43_v15 }
  0xc6   :  { %v138_v17 = vpop.f32.mrf.mxu0 }
  0xc7   :  { %v139_v26 = vadd.f32 %v138_v17, %v38_v21  ;;  %v158_v28 = vmax.f32 %v144_v23, 0.0 }
  0xc8   :  { %v381_v18 = vpop.f32.mrf.mxu0 }
  0xc9   :  { %v154_v20 = vadd.f32 %v381_v18, %v53_v14  ;;  %v157_v29 = vmax.f32 %v139_v26, 0.0 }
  0xca   :  { %v148_v22 = vpop.f32.mrf.mxu0 }
  0xcb   :  { %v160_v24 = vmax.f32 %v154_v20, 0.0  ;;  %v149_v25 = vadd.f32 %v148_v22, %v48_v19 }
  0xcd   :  { %v159_v27 = vmax.f32 %v149_v25, 0.0  ;;  %382 = vmatprep.subr.mxu1 %v160_v24 }
  0xce   :  { %383 = vmatpush3.msra.mxu1 %v160_v24 }
  0xcf   :  { %384 = vmatprep.subr.mxu1 %v159_v27 }
  0xd0   :  { %385 = vmatpush3.msra.mxu1 %v159_v27 }
  0xd1   :  { %386 = vmatprep.subr.mxu1 %v158_v28 }
  0xd2   :  { %387 = vmatpush3.msra.mxu1 %v158_v28 }
  0xd3   :  { %388 = vmatprep.subr.mxu1 %v157_v29 }
  0xd4   :  { %389 = vmatpush3.msra.mxu1 %v157_v29 }
  0xd5   :  { %391 = vmatmul.mubr.msk.f32.vlgmr.msra.gmra.mxu1 %vm175_vm2, %v162_v30 }
 0x195   :  { %v392_v33 = vpop.f32.mrf.mxu1 }
 0x196   :  { %v254_v34 = vadd.f32 %v392_v33, %v173_v32 }
 0x197   :  { %v248_v36 = vpop.f32.mrf.mxu1 }
 0x198   :  { %v258_v37 = vmax.f32 %v254_v34, 0.0  ;;  %v249_v38 = vadd.f32 %v248_v36, %v168_v35 }
 0x19a   :  { %v257_v39 = vmax.f32 %v249_v38, 0.0  ;;  %394 = vmatpush3.msra.mxu0 %v258_v37 }
 0x19b   :  { %395 = vmatprep.subr.mxu0 %v410_v31 }
 0x19c   :  { %396 = vmatpush3.msra.mxu0 %v257_v39 }
 0x19d   :  { %398 = vmatmul.mubr.msk.f32.vlgmr.msra.gmra.mxu0 %vm266_vm4, %v259_v40 }
 0x25d   :  { %v336_v42 = vpop.f32.mrf.mxu0 }
 0x25e   :  { %v337_v43 = vadd.f32 %v336_v42, %v264_v41 }
 0x25f   :  { %v399_v44 = vpop.f32.mrf.mxu0 }
 0x260   :  { %v359_v45 = vmul.f32 -1.442695, %v337_v43 }
 0x262   :  { %405 = vpow2.f32 %v359_v45 }
 0x26f   :  { %v406_v46 = vpop.eup %405 }
 0x270   :  { %v343_v47 = vadd.f32 1.0, %v406_v46 }
 0x272   :  { %407 = vrcp.f32 %v343_v47 }
 0x27f   :  { %v408_v48 = vpop.eup %407 }
 0x280   :  { %346 = vst [vmem:[%s513_s7] sm:$0x7] %v408_v48 }

</bundles_post_ra>
